<compile_context>
chip_gen: v7x
topology: tpu7x:2x2x1
jax: 0.10.0
libtpu: 0.0.40
codegen_flags: <defaults>
</compile_context>

<pallas_src>
import functools

import jax
import jax.numpy as jnp
from jax.experimental import pallas as pl
from jax.experimental.pallas import tpu as pltpu

IN_FEATURES = 32 * 32   # 1024
OUT_FEATURES = 10
LANE = 128
SUBLANE = 8


def _round_up(x, m):
    return ((x + m - 1) // m) * m


def _cdiv(a, b):
    return (a + b - 1) // b


def mlp_relu_kernel(x_ref, w1_ref, b1_ref, w2_ref, b2_ref, o_ref):
    # x_ref:  (TM, 1024) bf16
    # w1_ref: (1024, H_pad) bf16, b1_ref: (1, H_pad) f32
    # w2_ref: (H_pad, N_pad) bf16, b2_ref: (1, N_pad) f32
    # o_ref:  (TM, N_pad) f32
    h = jnp.dot(x_ref[...], w1_ref[...], preferred_element_type=jnp.float32)
    h = jnp.maximum(h + b1_ref[...], 0.0)       # ReLU; hidden never touches HBM
    h = h.astype(jnp.bfloat16)                  # bf16 feed for the second MXU pass
    o = jnp.dot(h, w2_ref[...], preferred_element_type=jnp.float32)
    o_ref[...] = o + b2_ref[...]


def prepare_params(w1_t, b1, w2_t, b2):
    """Pad/cast parameters ONCE (hoisted out of the forward wrapper).

    w1_t: (1024, H)  layer1.weight pre-transposed
    b1:   (H,)
    w2_t: (H, 10)    layer2.weight pre-transposed
    b2:   (10,)
    Returns bf16 padded weights and f32 padded biases.
    Zero padding keeps semantics exact: padded hidden columns give
    relu(0 + 0) = 0 and multiply zero rows of w2; padded output lanes are
    sliced away in the wrapper.
    """
    hidden = w1_t.shape[1]
    H_pad = _round_up(hidden, LANE)
    N_pad = _round_up(OUT_FEATURES, LANE)       # 128

    w1_p = jnp.pad(w1_t.astype(jnp.bfloat16), ((0, 0), (0, H_pad - hidden)))
    b1_p = jnp.pad(b1.reshape(1, hidden).astype(jnp.float32),
                   ((0, 0), (0, H_pad - hidden)))
    w2_p = jnp.pad(w2_t.astype(jnp.bfloat16),
                   ((0, H_pad - hidden), (0, N_pad - OUT_FEATURES)))
    b2_p = jnp.pad(b2.reshape(1, OUT_FEATURES).astype(jnp.float32),
                   ((0, 0), (0, N_pad - OUT_FEATURES)))
    return w1_p, b1_p, w2_p, b2_p


def my_ann_l2_relu_forward(x, w1_p, b1_p, w2_p, b2_p, *, tm=512):
    """Forward pass of my_ANN_L2_relu with pre-padded/cast params.

    x: (B, C, H, W) with C*H*W == 1024.  Returns (B, 10) float32.
    """
    B = x.shape[0]
    x_flat = x.reshape(B, -1).astype(jnp.bfloat16)   # torch.flatten(x, 1), bf16 feed
    assert x_flat.shape[1] == IN_FEATURES

    H_pad = w1_p.shape[1]
    N_pad = w2_p.shape[1]

    # Batch tile: sublane-aligned; prefer >=2 grid steps so v7x's two
    # TensorCores both get work (no-op for v5e/v6e single TC), clamped for
    # tiny batches.  No batch padding: Pallas handles the partial last block.
    TM = min(tm, max(SUBLANE, _round_up(_cdiv(B, 2), SUBLANE)))
    grid = (_cdiv(B, TM),)

    # Explicit VMEM budget: x/out double-buffered, resident weights single-
    # buffered. Clamp to [16 MiB, 64 MiB] (v5e scoped default .. v7x physical).
    bytes_needed = (
        2 * TM * IN_FEATURES * 2      # x tiles   (bf16, 2 bufs)
        + IN_FEATURES * H_pad * 2     # w1        (bf16, 1 buf)
        + H_pad * 4                   # b1        (f32, 1 buf)
        + H_pad * N_pad * 2           # w2        (bf16, 1 buf)
        + N_pad * 4                   # b2        (f32, 1 buf)
        + 2 * TM * N_pad * 4          # out tiles (f32, 2 bufs)
    )
    vmem_limit = min(max(int(1.5 * bytes_needed) + (2 << 20), 16 << 20), 64 << 20)

    # Single-buffer the blocks that never change across grid steps.
    resident = functools.partial(pl.BlockSpec, pipeline_mode=pl.Buffered(1))

    out_padded = pl.pallas_call(
        mlp_relu_kernel,
        out_shape=jax.ShapeDtypeStruct((B, N_pad), jnp.float32),
        grid_spec=pltpu.PrefetchScalarGridSpec(
            num_scalar_prefetch=0,
            grid=grid,
            in_specs=[
                # x: tiled over batch, software-pipelined (double-buffered).
                pl.BlockSpec((TM, IN_FEATURES), lambda i: (i, 0)),
                # Weights/biases: constant index map, single-buffered, resident.
                resident((IN_FEATURES, H_pad), lambda i: (0, 0)),
                resident((1, H_pad), lambda i: (0, 0)),
                resident((H_pad, N_pad), lambda i: (0, 0)),
                resident((1, N_pad), lambda i: (0, 0)),
            ],
            out_specs=pl.BlockSpec((TM, N_pad), lambda i: (i, 0)),
        ),
        compiler_params=pltpu.CompilerParams(
            dimension_semantics=("parallel",),   # batch steps are independent
            vmem_limit_bytes=vmem_limit,
        ),
    )(x_flat, w1_p, b1_p, w2_p, b2_p)

    # TODO(synk): for very large hidden widths (H_pad >~ 8192 where w1 no longer
    # fits resident even in bf16), add a second "arbitrary" grid axis over H_pad
    # chunks with an f32 accumulator in scratch instead of shrinking TM.
    return out_padded[:, :OUT_FEATURES]


def init_params(key, num_layer1):
    # Deterministic init mimicking nn.Linear's U(-1/sqrt(fan_in), 1/sqrt(fan_in)).
    k1w, k1b, k2w, k2b = jax.random.split(key, 4)
    bound1 = 1.0 / jnp.sqrt(jnp.float32(IN_FEATURES))
    bound2 = 1.0 / jnp.sqrt(jnp.float32(num_layer1))
    # Stored pre-transposed: (in_features, out_features)
    w1_t = jax.random.uniform(k1w, (IN_FEATURES, num_layer1), jnp.float32,
                              -bound1, bound1)
    b1 = jax.random.uniform(k1b, (num_layer1,), jnp.float32, -bound1, bound1)
    w2_t = jax.random.uniform(k2w, (num_layer1, OUT_FEATURES), jnp.float32,
                              -bound2, bound2)
    b2 = jax.random.uniform(k2b, (OUT_FEATURES,), jnp.float32, -bound2, bound2)
    return w1_t, b1, w2_t, b2


if __name__ == "__main__":
    key = jax.random.PRNGKey(0)
    k_x, k_p = jax.random.split(key)

    # Small deterministic input consistent with the module: NCHW (2, 1, 32, 32).
    B = 2
    num_layer1 = 100   # non-128-aligned hidden width to exercise the padding path
    x = jax.random.normal(k_x, (B, 1, 32, 32), jnp.float32)
    w1_t, b1, w2_t, b2 = init_params(k_p, num_layer1)

    # Pad/cast params once (not per forward call).
    w1_p, b1_p, w2_p, b2_p = prepare_params(w1_t, b1, w2_t, b2)

    out = my_ann_l2_relu_forward(x, w1_p, b1_p, w2_p, b2_p)
    out = jax.block_until_ready(out)

    # Sanity check against a full-f32 plain-JAX reference of the PyTorch forward.
    # bf16 MXU inputs with f32 accumulation -> loosened tolerance.
    x_flat = x.reshape(B, -1)
    h_ref = jnp.maximum(x_flat @ w1_t + b1[None, :], 0.0)
    ref = h_ref @ w2_t + b2[None, :]
    assert out.shape == (B, OUT_FEATURES)
    assert jnp.allclose(out, ref, atol=3e-2, rtol=3e-2)

    print("KERNEL_OK")
</pallas_src>

<mosaic_0001>
module attributes {stable_mosaic.version = 11 : i64} {
  func.func @mlp_relu_kernel(%arg0: i32, %arg1: memref<8x1024xbf16, #tpu.memory_space<vmem>>, %arg2: memref<1024x128xbf16, #tpu.memory_space<vmem>>, %arg3: memref<1x128xf32, #tpu.memory_space<vmem>>, %arg4: memref<128x128xbf16, #tpu.memory_space<vmem>>, %arg5: memref<1x128xf32, #tpu.memory_space<vmem>>, %arg6: memref<8x128xf32, #tpu.memory_space<vmem>>) attributes {dimension_semantics = [#tpu.dimension_semantics<parallel>], iteration_bounds = array<i64: 1>, scalar_prefetch = 0 : i64, scratch_operands = 0 : i64, tpu.core_type = #tpu.core_type<tc>, window_params = [{transform_indices = @transform_0, window_bounds = array<i64: 8, 1024>}, {pipeline_mode = #tpu.pipeline_mode<synchronous>, transform_indices = @transform_1, window_bounds = array<i64: 1024, 128>}, {pipeline_mode = #tpu.pipeline_mode<synchronous>, transform_indices = @transform_2, window_bounds = array<i64: 1, 128>}, {pipeline_mode = #tpu.pipeline_mode<synchronous>, transform_indices = @transform_3, window_bounds = array<i64: 128, 128>}, {pipeline_mode = #tpu.pipeline_mode<synchronous>, transform_indices = @transform_4, window_bounds = array<i64: 1, 128>}, {transform_indices = @transform_5, window_bounds = array<i64: 8, 128>}]} {
    %c0 = arith.constant 0 : index
    %c0_0 = arith.constant 0 : index
    %0 = vector.load %arg1[%c0, %c0_0] : memref<8x1024xbf16, #tpu.memory_space<vmem>>, vector<8x1024xbf16>
    %c0_1 = arith.constant 0 : index
    %c0_2 = arith.constant 0 : index
    %1 = vector.load %arg2[%c0_1, %c0_2] : memref<1024x128xbf16, #tpu.memory_space<vmem>>, vector<1024x128xbf16>
    %cst = arith.constant dense<0.000000e+00> : vector<8x128xf32>
    %2 = tpu.matmul %0, %1, %cst {dimension_numbers = #tpu.dot_dimension_numbers<[1], [0], [0], [1], [0, 0, 1, 1], [], []>} : vector<8x1024xbf16>, vector<1024x128xbf16>, vector<8x128xf32> -> vector<8x128xf32>
    %c0_3 = arith.constant 0 : index
    %c0_4 = arith.constant 0 : index
    %3 = vector.load %arg3[%c0_3, %c0_4] : memref<1x128xf32, #tpu.memory_space<vmem>>, vector<1x128xf32>
    %4 = vector.broadcast %3 : vector<1x128xf32> to vector<8x128xf32>
    %5 = arith.addf %2, %4 : vector<8x128xf32>
    %cst_5 = arith.constant 0.000000e+00 : f32
    %6 = vector.broadcast %cst_5 : f32 to vector<8x128xf32>
    %7 = arith.maximumf %5, %6 : vector<8x128xf32>
    %8 = arith.truncf %7 : vector<8x128xf32> to vector<8x128xbf16>
    %c0_6 = arith.constant 0 : index
    %c0_7 = arith.constant 0 : index
    %9 = vector.load %arg4[%c0_6, %c0_7] : memref<128x128xbf16, #tpu.memory_space<vmem>>, vector<128x128xbf16>
    %cst_8 = arith.constant dense<0.000000e+00> : vector<8x128xf32>
    %10 = tpu.matmul %8, %9, %cst_8 {dimension_numbers = #tpu.dot_dimension_numbers<[1], [0], [0], [1], [0, 0, 1, 1], [], []>} : vector<8x128xbf16>, vector<128x128xbf16>, vector<8x128xf32> -> vector<8x128xf32>
    %c0_9 = arith.constant 0 : index
    %c0_10 = arith.constant 0 : index
    %11 = vector.load %arg5[%c0_9, %c0_10] : memref<1x128xf32, #tpu.memory_space<vmem>>, vector<1x128xf32>
    %12 = vector.broadcast %11 : vector<1x128xf32> to vector<8x128xf32>
    %13 = arith.addf %10, %12 : vector<8x128xf32>
    %c0_11 = arith.constant 0 : index
    %c0_12 = arith.constant 0 : index
    %14 = vector.load %arg6[%c0_11, %c0_12] : memref<8x128xf32, #tpu.memory_space<vmem>>, vector<8x128xf32>
    tpu.vector_store %arg6[%c0_11, %c0_12], %13 {strides = array<i32>} : memref<8x128xf32, #tpu.memory_space<vmem>>, vector<8x128xf32>,
    return
  }
  func.func @transform_0(%arg0: i32) -> (i32, i32) {
    %c0_i32 = arith.constant 0 : i32
    %c0_i32_0 = arith.constant 0 : i32
    return %arg0, %c0_i32 : i32, i32
  }
  func.func @transform_1(%arg0: i32) -> (i32, i32) {
    %c0_i32 = arith.constant 0 : i32
    %c0_i32_0 = arith.constant 0 : i32
    %c0_i32_1 = arith.constant 0 : i32
    return %c0_i32, %c0_i32_0 : i32, i32
  }
  func.func @transform_2(%arg0: i32) -> (i32, i32) {
    %c0_i32 = arith.constant 0 : i32
    %c0_i32_0 = arith.constant 0 : i32
    %c0_i32_1 = arith.constant 0 : i32
    return %c0_i32, %c0_i32_0 : i32, i32
  }
  func.func @transform_3(%arg0: i32) -> (i32, i32) {
    %c0_i32 = arith.constant 0 : i32
    %c0_i32_0 = arith.constant 0 : i32
    %c0_i32_1 = arith.constant 0 : i32
    return %c0_i32, %c0_i32_0 : i32, i32
  }
  func.func @transform_4(%arg0: i32) -> (i32, i32) {
    %c0_i32 = arith.constant 0 : i32
    %c0_i32_0 = arith.constant 0 : i32
    %c0_i32_1 = arith.constant 0 : i32
    return %c0_i32, %c0_i32_0 : i32, i32
  }
  func.func @transform_5(%arg0: i32) -> (i32, i32) {
    %c0_i32 = arith.constant 0 : i32
    %c0_i32_0 = arith.constant 0 : i32
    return %arg0, %c0_i32 : i32, i32
  }
}

</mosaic_0001>

<bundles_post_ra>
// kernel: tpu_custom_call.1
= control target key start
LH: loop header
LB: loop body
LE: loop exit
PB: predicated region body
PF: predicated region fallthrough
CT: control target
= control target key end

     0   :  { %10 = vsyncpa [#allocation3], 0  ;;  %s1455_s0 = inlined_call_operand.hbm [shape: bf16[2,1024], index: 0, kind: input, shape index: {}]   ;;  %s1456_s1 = inlined_call_operand.hbm [shape: bf16[1024,128], index: 1, kind: input, shape index: {}]   ;;  %s1457_s2 = inlined_call_operand.vmem [shape: f32[1,128], index: 2, kind: input, shape index: {}]   ;;  %s1458_s3 = inlined_call_operand.hbm [shape: bf16[128,128], index: 3, kind: input, shape index: {}]   ;;  %s1459_s4 = inlined_call_operand.vmem [shape: f32[1,128], index: 4, kind: input, shape index: {}]   ;;  %s1460_s5 = inlined_call_operand.hbm [shape: f32[2,128], index: 5, kind: output, shape index: {}]  }
   0x1   :  { %11 = vsyncpa [#allocation6], 0 }
   0x2   :  { %12 = vsyncpa [#allocation4], 0 }
   0x3   :  { %17 = vsyncadd [#allocation3], 384  ;;  %s1334_s18 = smov [#allocation5]   ;;  %s1240_s22 = scalar_lea.hbm %s1456_s1, 8192 }
   0x4   :  { %s30_s19 = sshll.u32 %s1334_s18, 4  ;;  %p1241_p0 = scmp.ne.s32.totalorder %s1456_s1, %s1240_s22  ;;  %s31_s19 = int_to_ptr.vmem [resolvable:$true] %s30_s19 }
   0x5   :  { %p1244_p1 = scmp.lt.u32.totalorder %s1240_s22, %s1456_s1 }
   0x7   :  { %p1246_p2 = pnand %p1244_p1, %p1241_p0 }
   0x9   :  { %1249 = shalt.err (!%p1246_p2)
}
   0xa   :  { %s1250_s27 = scalar_lea.vmem %s31_s19, 8192  ;;  %p1255_p4 = scmp.lt.s32.totalorder %s31_s19, %s31_s19 }
   0xb   :  { %p1251_p3 = scmp.ne.s32.totalorder %s31_s19, %s1250_s27  ;;  %p1256_p5 = scmp.lt.s32.totalorder %s1250_s27, %s1250_s27 }
   0xd   :  { %p1257_p6 = por %p1256_p5, %p1255_p4 }
   0xf   :  { %p1258_p7 = pnand %p1257_p6, %p1251_p3 }
  0x11   :  { %1261 = shalt.err (!%p1258_p7)
}
  0x12   :  { %s1335_s28 = smov 64   ;;  %s1336_s29 = smov 4  }
  0x13   :  { %36 = dma.hbm_to_vmem [thread:$0]  %s1456_s1, 8192, %s31_s19, [#allocation6], %s1335_s28, %s1335_s28, %s1336_s29  }
  0x14   :  { %s1337_s7 = smov [#allocation2]   ;;  %s1262_s11 = scalar_lea.hbm %s1455_s0, 128 }
  0x15   :  { %s18_s8 = sshll.u32 %s1337_s7, 4  ;;  %p1263_p8 = scmp.ne.s32.totalorder %s1455_s0, %s1262_s11  ;;  %s19_s8 = int_to_ptr.vmem [resolvable:$true] %s18_s8 }
  0x16   :  { %p1266_p9 = scmp.lt.u32.totalorder %s1262_s11, %s1455_s0 }
  0x18   :  { %p1268_p10 = pnand %p1266_p9, %p1263_p8 }
  0x1a   :  { %1271 = shalt.err (!%p1268_p10)
}
  0x1b   :  { %s1272_s16 = scalar_lea.vmem %s19_s8, 128  ;;  %s1276_s1 = scalar_lea.vmem %s19_s8, 512 }
  0x1c   :  { %p1273_p11 = scmp.ne.s32.totalorder %s19_s8, %s1272_s16  ;;  %p1277_p12 = scmp.lt.s32.totalorder %s19_s8, %s19_s8 }
  0x1d   :  { %p1278_p13 = scmp.lt.s32.totalorder %s1276_s1, %s1272_s16 }
  0x1f   :  { %p1279_p0 = por %p1278_p13, %p1277_p12 }
  0x21   :  { %p1280_p1 = pnand %p1279_p0, %p1273_p11 }
  0x23   :  { %1283 = shalt.err (!%p1280_p1)
}
  0x24   :  { %s1338_s17 = smov 128   ;;  %s1339_s18 = smov 8  }
  0x25   :  { %24 = dma.hbm_to_vmem [thread:$0]  %s1455_s0, 128, %s19_s8, [#allocation3], %s1338_s17, %s1338_s17, %s1339_s18  }
  0x26   :  { %s1340_s21 = smov [#allocation7]   ;;  %s1284_s25 = scalar_lea.hbm %s1458_s3, 1024 }
  0x27   :  { %s44_s22 = sshll.u32 %s1340_s21, 4  ;;  %p1285_p2 = scmp.ne.s32.totalorder %s1458_s3, %s1284_s25  ;;  %s45_s22 = int_to_ptr.vmem [resolvable:$true] %s44_s22 }
  0x28   :  { %p1288_p3 = scmp.lt.u32.totalorder %s1284_s25, %s1458_s3 }
  0x2a   :  { %p1290_p4 = pnand %p1288_p3, %p1285_p2 }
  0x2c   :  { %1293 = shalt.err (!%p1290_p4)
}
  0x2d   :  { %s1294_s7 = scalar_lea.vmem %s45_s22, 1024  ;;  %p1299_p6 = scmp.lt.s32.totalorder %s45_s22, %s45_s22 }
  0x2e   :  { %p1295_p5 = scmp.ne.s32.totalorder %s45_s22, %s1294_s7  ;;  %p1300_p7 = scmp.lt.s32.totalorder %s1294_s7, %s1294_s7 }
  0x30   :  { %p1301_p8 = por %p1300_p7, %p1299_p6 }
  0x32   :  { %p1302_p9 = pnand %p1301_p8, %p1295_p5 }
  0x34   :  { %1305 = shalt.err (!%p1302_p9)
}
  0x35   :  { %50 = dma.hbm_to_vmem [thread:$0]  %s1458_s3, 1024, %s45_s22, [#allocation6], %s1335_s28, %s1335_s28, %s1336_s29  }
  0x36   :  { %1328 = dma.done.wait [#allocation3], 512  }
  0x37   :  { %1329 = vsyncadd [#allocation3], 4294966784 }
  0x38   :  { %1330 = dma.done.wait [#allocation6], 9216  }
  0x39   :  { %1331 = vsyncadd [#allocation6], 4294958080  ;;  %v1162_v0 = vld [vmem:[#allocation5 + $0x40] sm:$0xff]   ;;  %v1166_v4 = vld [vmem:[#allocation5 + $0x48] sm:$0xff]   ;;  %v1341_v24 = vmov 1966171168   ;;  %v213_v26 = vlaneseq }
  0x3a   :  { %v1163_v1 = vld [vmem:[#allocation5 + $0xc0] sm:$0xff]   ;;  %1032 = vmatprep.subr.bf16.mxu0 %v1162_v0  ;;  %v1167_v5 = vld [vmem:[#allocation5 + $0xc8] sm:$0xff]   ;;  %v1170_v8 = vld [vmem:[#allocation5 + $0x50] sm:$0xff]   ;;  %v211_v25 = vunpack.c.l.s4 %v1341_v24  ;;  %vm1343_vm0 = vmmov 0  }
  0x3b   :  { %v1164_v2 = vld [vmem:[#allocation5] sm:$0xff]   ;;  %1054 = vmatprep.subr.bf16.mxu1 %v1163_v1  ;;  %v1168_v6 = vld [vmem:[#allocation5 + $0x8] sm:$0xff]   ;;  %v1171_v9 = vld [vmem:[#allocation5 + $0xd0] sm:$0xff]   ;;  %v214_v32 = vshrl.u32 %v213_v26, 7 }
  0x3c   :  { %v1165_v3 = vld [vmem:[#allocation5 + $0x80] sm:$0xff]   ;;  %1033 = vmatpush3.bf16.msra.mxu0 %v1164_v2  ;;  %v1169_v7 = vld [vmem:[#allocation5 + $0x88] sm:$0xff]   ;;  %v1172_v10 = vld [vmem:[#allocation5 + $0x10] sm:$0xff]   ;;  %v212_v31 = vunpack.c.0.s8 %v211_v25 }
  0x3d   :  { %1055 = vmatpush3.bf16.msra.mxu1 %v1165_v3  ;;  %1034 = vmatprep.subr.bf16.mxu0 %v1166_v4  ;;  %v1173_v11 = vld [vmem:[#allocation5 + $0x90] sm:$0xff]   ;;  %v1174_v12 = vld [vmem:[#allocation5 + $0x58] sm:$0xff]   ;;  %v1178_v16 = vld [vmem:[#allocation5 + $0x60] sm:$0xff]  }
  0x3e   :  { %1056 = vmatprep.subr.bf16.mxu1 %v1167_v5  ;;  %v1175_v13 = vld [vmem:[#allocation5 + $0xd8] sm:$0xff]   ;;  %v1179_v17 = vld [vmem:[#allocation5 + $0xe0] sm:$0xff]   ;;  %v1182_v20 = vld [vmem:[#allocation5 + $0x68] sm:$0xff]   ;;  %v1419_v37 = vsub.s32 %v212_v31, %v214_v32 }
  0x3f   :  { %v1176_v14 = vld [vmem:[#allocation5 + $0x18] sm:$0xff]   ;;  %v1180_v18 = vld [vmem:[#allocation5 + $0x20] sm:$0xff]   ;;  %v1183_v21 = vld [vmem:[#allocation5 + $0xe8] sm:$0xff]  }
  0x40   :  { %1035 = vmatpush3.bf16.msra.mxu0 %v1168_v6  ;;  %v1177_v15 = vld [vmem:[#allocation5 + $0x98] sm:$0xff]   ;;  %v1181_v19 = vld [vmem:[#allocation5 + $0xa0] sm:$0xff]   ;;  %v1184_v22 = vld [vmem:[#allocation5 + $0x28] sm:$0xff]  }
  0x41   :  { %1057 = vmatpush3.bf16.msra.mxu1 %v1169_v7  ;;  %1036 = vmatprep.subr.bf16.mxu0 %v1170_v8  ;;  %v1185_v23 = vld [vmem:[#allocation5 + $0xa8] sm:$0xff]   ;;  %v1186_v27 = vld [vmem:[#allocation5 + $0x70] sm:$0xff]   ;;  %v1190_v33 = vld [vmem:[#allocation5 + $0x78] sm:$0xff]  }
  0x42   :  { %1058 = vmatprep.subr.bf16.mxu1 %v1171_v9  ;;  %v1187_v28 = vld [vmem:[#allocation5 + $0xf0] sm:$0xff]   ;;  %v1191_v34 = vld [vmem:[#allocation5 + $0xf8] sm:$0xff]   ;;  %v1194_v38 = vld [vmem:[#allocation2] ss:$8 sps:$4 sm:$0xff]  }
  0x43   :  { %v1188_v29 = vld [vmem:[#allocation5 + $0x30] sm:$0xff]   ;;  %v1192_v35 = vld [vmem:[#allocation5 + $0x38] sm:$0xff]   ;;  %v1196_v39 = vld [vmem:[#allocation2 + $0x4] ss:$8 sps:$4 sm:$0xff]   ;;  %v216_v42 = vrot.slane %v1194_v38, %v1419_v37 }
  0x44   :  { %1037 = vmatpush3.bf16.msra.mxu0 %v1172_v10  ;;  %v1189_v30 = vld [vmem:[#allocation5 + $0xb0] sm:$0xff]   ;;  %v1193_v36 = vld [vmem:[#allocation5 + $0xb8] sm:$0xff]   ;;  %v1200_v43 = vld [vmem:[#allocation5 + $0x140] sm:$0xff]   ;;  %v1423_v44 = vrot.slane %v1196_v39, %v1419_v37 }
  0x45   :  { %1059 = vmatpush3.bf16.msra.mxu1 %v1173_v11  ;;  %1038 = vmatprep.subr.bf16.mxu0 %v1174_v12  ;;  %v1197_v40 = vld [vmem:[#allocation2 + $0x10] ss:$8 sps:$4 sm:$0xff]   ;;  %v1199_v41 = vld [vmem:[#allocation2 + $0x14] ss:$8 sps:$4 sm:$0xff]   ;;  %v1201_v46 = vld [vmem:[#allocation5 + $0x1c0] sm:$0xff]  }
  0x46   :  { %1060 = vmatprep.subr.bf16.mxu1 %v1175_v13  ;;  %v230_v45 = vrot.slane %v1197_v40, %v1419_v37  ;;  %v1427_v47 = vrot.slane %v1199_v41, %v1419_v37  ;;  %v1202_v51 = vld [vmem:[#allocation5 + $0x100] sm:$0xff]   ;;  %v1204_v56 = vld [vmem:[#allocation5 + $0x148] sm:$0xff]   ;;  %v1208_v63 = vld [vmem:[#allocation5 + $0x150] sm:$0xff]  }
  0x47   :  { %v1203_v54 = vld [vmem:[#allocation5 + $0x180] sm:$0xff]   ;;  %v1205_v59 = vld [vmem:[#allocation5 + $0x1c8] sm:$0xff]   ;;  %v1209_v0 = vld [vmem:[#allocation5 + $0x1d0] sm:$0xff]  }
  0x48   :  { %1039 = vmatpush3.bf16.msra.mxu0 %v1176_v14  ;;  %v239_v48 = vcombine.high %v216_v42, %v230_v45  ;;  %v238_v49 = vcombine.low %v216_v42, %v230_v45  ;;  %v241_v50 = vcombine.high %v1423_v44, %v1427_v47  ;;  %v1206_v60 = vld [vmem:[#allocation5 + $0x108] sm:$0xff]   ;;  %v1210_v1 = vld [vmem:[#allocation5 + $0x110] sm:$0xff]   ;;  %v1212_v3 = vld [vmem:[#allocation5 + $0x158] sm:$0xff]  }
  0x49   :  { %1061 = vmatpush3.bf16.msra.mxu1 %v1177_v15  ;;  %1040 = vmatprep.subr.bf16.mxu0 %v1178_v16  ;;  %v1207_v62 = vld [vmem:[#allocation5 + $0x188] sm:$0xff]   ;;  %v1211_v2 = vld [vmem:[#allocation5 + $0x190] sm:$0xff]   ;;  %v1213_v4 = vld [vmem:[#allocation5 + $0x1d8] sm:$0xff]  }
  0x4a   :  { %1062 = vmatprep.subr.bf16.mxu1 %v1179_v17  ;;  %v262_v52 = vrot.slane %v239_v48, %v1419_v37  ;;  %v248_v53 = vrot.slane %v238_v49, %v1419_v37  ;;  %v269_v55 = vrot.slane %v241_v50, %v1419_v37  ;;  %v1214_v5 = vld [vmem:[#allocation5 + $0x118] sm:$0xff]   ;;  %v1216_v7 = vld [vmem:[#allocation5 + $0x160] sm:$0xff]   ;;  %v1220_v11 = vld [vmem:[#allocation5 + $0x168] sm:$0xff]  }
  0x4b   :  { %v1215_v6 = vld [vmem:[#allocation5 + $0x198] sm:$0xff]   ;;  %v1217_v8 = vld [vmem:[#allocation5 + $0x1e0] sm:$0xff]   ;;  %v1221_v12 = vld [vmem:[#allocation5 + $0x1e8] sm:$0xff]  }
  0x4c   :  { %1041 = vmatpush3.bf16.msra.mxu0 %v1180_v18  ;;  %698 = vmatprep.mubr.bf16.mxu0 %v262_v52  ;;  %v272_v57 = vcombine.high %v262_v52, %v262_v52  ;;  %v270_v58 = vcombine.high %v248_v53, %v248_v53  ;;  %v273_v61 = vcombine.high %v269_v55, %v269_v55  ;;  %v1218_v9 = vld [vmem:[#allocation5 + $0x120] sm:$0xff]   ;;  %v1222_v13 = vld [vmem:[#allocation5 + $0x128] sm:$0xff]   ;;  %v1224_v15 = vld [vmem:[#allocation5 + $0x170] sm:$0xff]  }
  0x4d   :  { %1063 = vmatpush3.bf16.msra.mxu1 %v1181_v19  ;;  %1042 = vmatprep.subr.bf16.mxu0 %v1182_v20  ;;  %v1219_v10 = vld [vmem:[#allocation5 + $0x1a0] sm:$0xff]   ;;  %v1223_v14 = vld [vmem:[#allocation5 + $0x1a8] sm:$0xff]   ;;  %v1225_v16 = vld [vmem:[#allocation5 + $0x1f0] sm:$0xff]  }
  0x4e   :  { %1064 = vmatprep.subr.bf16.mxu1 %v1183_v21  ;;  %738 = vmatprep.mubr.bf16.mxu1 %v272_v57  ;;  %v1226_v17 = vld [vmem:[#allocation5 + $0x130] sm:$0xff]   ;;  %v1228_v19 = vld [vmem:[#allocation5 + $0x178] sm:$0xff]   ;;  %v240_v21 = vcombine.low %v1423_v44, %v1427_v47  ;;  %v1232_v26 = vld [vmem:[#allocation7] sm:$0xff]  }
  0x4f   :  { %v1227_v18 = vld [vmem:[#allocation5 + $0x1b0] sm:$0xff]   ;;  %v1229_v20 = vld [vmem:[#allocation5 + $0x1f8] sm:$0xff]   ;;  %v1236_v31 = vld [vmem:[#allocation7 + $0x20] sm:$0xff]  }
  0x50   :  { %1043 = vmatpush3.bf16.msra.mxu0 %v1184_v22  ;;  %v1230_v22 = vld [vmem:[#allocation5 + $0x138] sm:$0xff]   ;;  %v255_v24 = vrot.slane %v240_v21, %v1419_v37  ;;  %v1237_v32 = vld [vmem:[#allocation7 + $0x28] sm:$0xff]  }
  0x51   :  { %1065 = vmatpush3.bf16.msra.mxu1 %v1185_v23  ;;  %1044 = vmatprep.subr.bf16.mxu0 %v1186_v27  ;;  %v1231_v23 = vld [vmem:[#allocation5 + $0x1b8] sm:$0xff]   ;;  %v1342_v27 = vmov 0.0  }
  0x52   :  { %1066 = vmatprep.subr.bf16.mxu1 %v1187_v28  ;;  %v271_v25 = vcombine.high %v255_v24, %v255_v24  ;;  %v1233_v28 = vld [vmem:[#allocation7 + $0x8] sm:$0xff]  }
  0x54   :  { %1045 = vmatpush3.bf16.msra.mxu0 %v1188_v29  ;;  %v1234_v29 = vld [vmem:[#allocation7 + $0x10] sm:$0xff]  }
  0x55   :  { %1067 = vmatpush3.bf16.msra.mxu1 %v1189_v30  ;;  %1046 = vmatprep.subr.bf16.mxu0 %v1190_v33  ;;  %v1235_v30 = vld [vmem:[#allocation7 + $0x18] sm:$0xff]   ;;  %v1238_v33 = vld [vmem:[#allocation7 + $0x30] sm:$0xff]  }
  0x56   :  { %1068 = vmatprep.subr.bf16.mxu1 %v1191_v34  ;;  %v1239_v34 = vld [vmem:[#allocation7 + $0x38] sm:$0xff]  }
  0x58   :  { %1047 = vmatpush3.bf16.msra.mxu0 %v1192_v35 }
  0x59   :  { %1069 = vmatpush3.bf16.msra.mxu1 %v1193_v36  ;;  %1076 = vmatprep.subr.bf16.mxu0 %v1200_v43  ;;  %v958_v36 = vld [vmem:[%s1457_s2] ss:$0 sm:$0xff] }
  0x5a   :  { %1098 = vmatprep.subr.bf16.mxu1 %v1201_v46 }
  0x5b   :  { %699 = vmatmul.mubr.bf16.vlgmr.msra.gmra.mrb[0].mxu0 %v248_v53 }
  0x5c   :  { %1077 = vmatpush3.bf16.msra.mxu0 %v1202_v51  ;;  %739 = vmatmul.mubr.bf16.vlgmr.msra.gmra.mrb[0].mxu1 %v270_v58 }
  0x5d   :  { %1078 = vmatprep.subr.bf16.mxu0 %v1204_v56  ;;  %1099 = vmatpush3.bf16.msra.mxu1 %v1203_v54 }
  0x5e   :  { %778 = vmatprep.mubr.bf16.mxu0 %v269_v55  ;;  %1100 = vmatprep.subr.bf16.mxu1 %v1205_v59 }
  0x5f   :  { %818 = vmatprep.mubr.bf16.mxu1 %v273_v61 }
  0x60   :  { %1079 = vmatpush3.bf16.msra.mxu0 %v1206_v60 }
  0x61   :  { %1080 = vmatprep.subr.bf16.mxu0 %v1208_v63  ;;  %1101 = vmatpush3.bf16.msra.mxu1 %v1207_v62  ;;  %v1023_v62 = vld [vmem:[%s1459_s4] ss:$0 sm:$0xff] }
  0x62   :  { %1102 = vmatprep.subr.bf16.mxu1 %v1209_v0 }
  0x64   :  { %1081 = vmatpush3.bf16.msra.mxu0 %v1210_v1 }
  0x65   :  { %1082 = vmatprep.subr.bf16.mxu0 %v1212_v3  ;;  %1103 = vmatpush3.bf16.msra.mxu1 %v1211_v2 }
  0x66   :  { %1104 = vmatprep.subr.bf16.mxu1 %v1213_v4 }
  0x68   :  { %1083 = vmatpush3.bf16.msra.mxu0 %v1214_v5 }
  0x69   :  { %1084 = vmatprep.subr.bf16.mxu0 %v1216_v7  ;;  %1105 = vmatpush3.bf16.msra.mxu1 %v1215_v6 }
  0x6a   :  { %1106 = vmatprep.subr.bf16.mxu1 %v1217_v8 }
  0x6c   :  { %1085 = vmatpush3.bf16.msra.mxu0 %v1218_v9 }
  0x6d   :  { %1086 = vmatprep.subr.bf16.mxu0 %v1220_v11  ;;  %1107 = vmatpush3.bf16.msra.mxu1 %v1219_v10 }
  0x6e   :  { %1108 = vmatprep.subr.bf16.mxu1 %v1221_v12 }
  0x70   :  { %1087 = vmatpush3.bf16.msra.mxu0 %v1222_v13 }
  0x71   :  { %1088 = vmatprep.subr.bf16.mxu0 %v1224_v15  ;;  %1109 = vmatpush3.bf16.msra.mxu1 %v1223_v14 }
  0x72   :  { %1110 = vmatprep.subr.bf16.mxu1 %v1225_v16 }
  0x74   :  { %1089 = vmatpush3.bf16.msra.mxu0 %v1226_v17 }
  0x75   :  { %1090 = vmatprep.subr.bf16.mxu0 %v1228_v19  ;;  %1111 = vmatpush3.bf16.msra.mxu1 %v1227_v18 }
  0x76   :  { %1112 = vmatprep.subr.bf16.mxu1 %v1229_v20 }
  0x78   :  { %1091 = vmatpush3.bf16.msra.mxu0 %v1230_v22 }
  0x79   :  { %1113 = vmatpush3.bf16.msra.mxu1 %v1231_v23  ;;  %1129 = vmatprep.subr.bf16.mxu0 %v1342_v27 }
  0x7b   :  { %779 = vmatmul.mubr.bf16.vlgmr.msra.gmra.mrb[4].mxu0 %v255_v24 }
  0x7c   :  { %819 = vmatmul.mubr.bf16.vlgmr.msra.gmra.mrb[4].mxu1 %v271_v25  ;;  %1130 = vmatpush3.bf16.msra.mxu0 %v1232_v26 }
  0x7d   :  { %1131 = vmatprep.subr.bf16.mxu0 %v1342_v27  ;;  %1145 = vmatprep.mubr.msk.bf16.mxu0 %vm1343_vm0, %v1342_v27 }
  0x80   :  { %1132 = vmatpush3.bf16.msra.mxu0 %v1233_v28 }
  0x81   :  { %1133 = vmatprep.subr.bf16.mxu0 %v1342_v27 }
  0x84   :  { %1134 = vmatpush3.bf16.msra.mxu0 %v1234_v29 }
  0x85   :  { %1135 = vmatprep.subr.bf16.mxu0 %v1342_v27 }
  0x88   :  { %1136 = vmatpush3.bf16.msra.mxu0 %v1235_v30 }
  0x89   :  { %1137 = vmatprep.subr.bf16.mxu0 %v1342_v27 }
  0x8c   :  { %1138 = vmatpush3.bf16.msra.mxu0 %v1236_v31 }
  0x8d   :  { %1139 = vmatprep.subr.bf16.mxu0 %v1342_v27 }
  0x90   :  { %1140 = vmatpush3.bf16.msra.mxu0 %v1237_v32 }
  0x91   :  { %1141 = vmatprep.subr.bf16.mxu0 %v1342_v27 }
  0x94   :  { %1142 = vmatpush3.bf16.msra.mxu0 %v1238_v33 }
  0x95   :  { %1143 = vmatprep.subr.bf16.mxu0 %v1342_v27 }
  0x98   :  { %1144 = vmatpush3.bf16.msra.mxu0 %v1239_v34 }
 0x12e   :  { %v1048_v35 = vpop.f32.mrb[0].mxu0 }
 0x12f   :  { %v1049_v37 = vpop.f32.mrb[1].mxu0  ;;  %v1070_v38 = vpop.f32.mrb[0].mxu1 }
 0x130   :  { %v1050_v39 = vadd.f32 %v1049_v37, %v1048_v35  ;;  %v1051_v40 = vpop.f32.mrb[2].mxu0  ;;  %v1071_v41 = vpop.f32.mrb[1].mxu1 }
 0x131   :  { %v1052_v42 = vpop.f32.mrb[3].mxu0  ;;  %v1072_v44 = vadd.f32 %v1071_v41, %v1070_v38  ;;  %v1073_v45 = vpop.f32.mrb[2].mxu1 }
 0x132   :  { %v701_v43 = vadd.f32 %v1050_v39, %v958_v36  ;;  %v1074_v46 = vpop.f32.mrb[3].mxu1 }
 0x134   :  { %v741_v47 = vadd.f32 %v1072_v44, %v701_v43 }
 0x14e   :  { %v1092_v48 = vpop.f32.mrb[4].mxu0 }
 0x14f   :  { %v1093_v49 = vpop.f32.mrb[5].mxu0  ;;  %v1114_v50 = vpop.f32.mrb[4].mxu1 }
 0x150   :  { %v1094_v51 = vadd.f32 %v1093_v49, %v1092_v48  ;;  %v1095_v52 = vpop.f32.mrb[6].mxu0  ;;  %v1115_v53 = vpop.f32.mrb[5].mxu1 }
 0x151   :  { %v1096_v54 = vpop.f32.mrb[7].mxu0  ;;  %v1116_v56 = vadd.f32 %v1115_v53, %v1114_v50  ;;  %v1117_v57 = vpop.f32.mrb[6].mxu1 }
 0x152   :  { %v781_v55 = vadd.f32 %v1094_v51, %v741_v47  ;;  %v1118_v58 = vpop.f32.mrb[7].mxu1 }
 0x154   :  { %v821_v59 = vadd.f32 %v1116_v56, %v781_v55 }
 0x156   :  { %v826_v60 = vmax.f32 %v821_v59, 0.0 }
 0x158   :  { %v827_v61 = vpack.c.bf16 %v826_v60, %v826_v60 }
 0x15a   :  { %1146 = vmatmul.mubr.bf16.vlgmr.msra.gmra.mrb[8].mxu0 %v827_v61 }
 0x22d   :  { %v933_v63 = vpop.f32.mrb[8].mxu0 }
 0x22e   :  { %v934_v0 = vadd.f32 %v1023_v62, %v933_v63  ;;  %v1147_v1 = vpop.f32.mrb[9].mxu0 }
 0x22f   :  { %v936_v2 = vpop.f32.mrb[10].mxu0 }
 0x230   :  { %939 = vst [vmem:[#allocation8] sm:$0xff] %v934_v0  ;;  %v1148_v3 = vpop.f32.mrb[11].mxu0 }
 0x231   :  { %944 = vsyncadd [#allocation4], 96  ;;  %s1344_s9 = smov [#allocation8]  }
 0x232   :  { %s945_s10 = sshll.u32 %s1344_s9, 4  ;;  %s946_s10 = int_to_ptr.vmem [resolvable:$true] %s945_s10 }
 0x233   :  { %s1306_s11 = scalar_lea.vmem %s946_s10, 32  ;;  %s1310_s12 = scalar_lea.vmem %s946_s10, 128 }
 0x234   :  { %p1307_p10 = scmp.ne.s32.totalorder %s946_s10, %s1306_s11  ;;  %p1311_p11 = scmp.lt.s32.totalorder %s946_s10, %s946_s10 }
 0x235   :  { %p1312_p12 = scmp.lt.s32.totalorder %s1310_s12, %s1306_s11 }
 0x237   :  { %p1313_p13 = por %p1312_p12, %p1311_p11 }
 0x239   :  { %p1314_p0 = pnand %p1313_p13, %p1307_p10 }
 0x23b   :  { %1317 = shalt.err (!%p1314_p0)
}
 0x23c   :  { %s1318_s14 = scalar_lea.hbm %s1460_s5, 32 }
 0x23d   :  { %p1319_p1 = scmp.ne.s32.totalorder %s1460_s5, %s1318_s14  ;;  %p1322_p2 = scmp.lt.u32.totalorder %s1318_s14, %s1460_s5 }
 0x23f   :  { %p1324_p3 = pnand %p1322_p2, %p1319_p1 }
 0x241   :  { %1327 = shalt.err (!%p1324_p3)
}
 0x242   :  { %s1345_s18 = smov 32   ;;  %s1346_s19 = smov 2  }
 0x243   :  { %951 = dma.vmem_to_hbm [thread:$0]  %s946_s10, 32, %s1460_s5, [#allocation4], %s1345_s18, %s1345_s18, %s1346_s19  }
 0x244   :  { %1332 = dma.done.wait [#allocation4], 128  }
 0x245   :  { %1333 = vsyncadd [#allocation4], 4294967168 }
 0x246   :  { %955 = vsyncpa [#allocation3], 1 }
 0x247   :  { %956 = vsyncpa [#allocation6], 1 }
 0x248   :  { %957 = vsyncpa [#allocation4], 1 }

</bundles_post_ra>
